<compile_context>
chip_gen: v5e
topology: v5e:2x2
jax: 0.10.0
libtpu: 0.0.40
codegen_flags: <defaults>
</compile_context>

<pallas_src>
import math
from functools import partial

import jax
import jax.numpy as jnp
from jax.experimental import pallas as pl
from jax.experimental.pallas import tpu as pltpu


def _attn_kernel(q_ref, k_ref, v_ref, m_ref, q3_ref, out_ref, *, scale):
    """One grid step processes Gb batch rows x all H heads.

    Block layouts (the arrays' original HBM layouts -- no wrapper transposes):
      q_ref  : (Gb, H, S, D)   b-major  (PyTorch `input`)
      k_ref  : (H, Gb, D, S)   h-major  (PyTorch `input2` is already (H,B,D,S))
      v_ref  : (H, Gb, S, D)   h-major  (PyTorch `input3`)
      m_ref  : (Gb, H, S, S)   b-major  (mask.view(qk.size()))
      q3_ref : (H, Gb, S, S)   h-major output
      out_ref: (H, Gb, S, D)   h-major output
    """
    Gb, H, S, D = q_ref.shape

    # Fold the 1/sqrt(S) softmax scale into the smaller (S,D) operand.
    q_all = q_ref[...] * scale
    k_all = k_ref[...]
    v_all = v_ref[...]
    m_all = m_ref[...]

    # Static per-head loop (H is a trace-time constant). Slicing a major dim of
    # an in-register value is cheap; this bridges the b-major inputs and h-major
    # outputs without any in-kernel or wrapper-side (B,H)<->(H,B) transpose.
    for h in range(H):
        q = q_all[:, h]          # (Gb, S, D)
        k = k_all[h]             # (Gb, D, S)
        v = v_all[h]             # (Gb, S, D)
        m = m_all[:, h]          # (Gb, S, S)

        # qk = (q*scale) @ k, batched over the Gb batch rows
        qk = jnp.einsum("bsd,bdt->bst", q, k,
                        preferred_element_type=jnp.float32)

        # masked_fill(qk, m != 0, m): where the mask is nonzero take the mask value
        q3 = jnp.where(m != 0.0, m, qk)
        q3_ref[h] = q3.astype(q3_ref.dtype)

        # Numerically-stable softmax over the last dim; exact division (review
        # correctness note) -- cost is negligible at these sizes.
        mx = jnp.max(q3, axis=-1, keepdims=True)
        e = jnp.exp(q3 - mx)
        attn = e / jnp.sum(e, axis=-1, keepdims=True)

        out = jnp.einsum("bst,btd->bsd", attn.astype(v.dtype), v,
                         preferred_element_type=jnp.float32)
        out_ref[h] = out.astype(out_ref.dtype)
        # TODO(synk): a lane-dense (S*D=128-wide) `out` slab would need a
        # sublane->lane relayout (reshape (S,D)->(S*D,)) whose Mosaic lowering is
        # not guaranteed at these shapes; the output block here is ~1 KB/step so
        # the masked-vst penalty is negligible. Revisit if S*D grows large.
        # TODO(synk): for large S the (S,S) mask slab could be shipped as bf16
        # (halves its HBM bytes) when its fill values are bf16-representable.


def _choose_group_b(B, H, S, D, itemsize=4):
    """Pick how many batch rows (b's) one grid step processes.

    - Largest Gb dividing B whose double-buffered block footprint (q,k,v,out,
      mask,q3) fits a per-generation VMEM budget (v7x has only 64 MiB physical).
    - Collapse to a single grid step when the work is tiny (per-step overhead
      ~0.35 us dominates on the serial v5e/v6e grid); keep >=2 "parallel" steps
      (v7x megacore) only when each step moves enough bytes to amortize it.
    """
    per_pair = itemsize * (4 * S * D + 2 * S * S)   # q + k + v + out, mask + q3
    per_b = H * per_pair                            # one batch row spans all H heads
    try:
        vmem_cap = int(pltpu.get_tpu_info().vmem_capacity_bytes)
    except Exception:
        vmem_cap = 64 * 1024 * 1024                 # v7x floor
    budget = vmem_cap // 4                          # headroom for double-buffering / scratch

    fits = [g for g in range(1, B + 1)
            if B % g == 0 and 2 * g * per_b <= budget] or [1]
    gb = max(fits)                                  # fewest steps by default

    split_bytes = 1 << 20                           # ~1 MiB/step before splitting pays off
    if gb == B and B > 1:
        smaller = [g for g in fits if g < B and g * per_b >= split_bytes]
        if smaller:
            gb = max(smaller)                       # >=2 parallel steps, each big enough
    return gb, budget


def model_forward(inp, inp2, inp3, mask):
    """
    inp:  (B, H, S, D) float32        (PyTorch `input`)
    inp2: (H, B, D, S) float32        (PyTorch permutes it to (B,H,D,S) before the matmul)
    inp3: (H, B, S, D) float32
    mask: any shape with B*H*S*S elements (like PyTorch mask.view(qk.size()))
    returns (q3 (H,B,S,S), output (H,B,S,D))
    """
    B, H, S, D = inp.shape
    assert inp2.shape == (H, B, D, S)
    assert inp3.shape == (H, B, S, D)

    # scale uses the last dim of the (permuted) input2, which is S
    scale = 1.0 / math.sqrt(S)

    # mask.view(qk.size()) -> (B,H,S,S): a pure reshape (no transpose, no extra
    # HBM pass); same byte count as the original mask.
    m = jnp.reshape(mask.astype(jnp.float32), (B, H, S, S))

    Gb, vmem_budget = _choose_group_b(B, H, S, D)
    grid = (B // Gb,)

    # Raise the scoped-VMEM limit only when the block footprint needs it.
    need = 2 * Gb * H * 4 * (4 * S * D + 2 * S * S)
    vlim = None if need <= (16 << 20) else int(min(max(need * 2, 32 << 20),
                                                   vmem_budget * 2))

    kernel = partial(_attn_kernel, scale=scale)

    q3, out = pl.pallas_call(
        kernel,
        out_shape=(
            jax.ShapeDtypeStruct((H, B, S, S), jnp.float32),
            jax.ShapeDtypeStruct((H, B, S, D), jnp.float32),
        ),
        grid_spec=pltpu.PrefetchScalarGridSpec(
            num_scalar_prefetch=0,
            grid=grid,
            in_specs=[
                pl.BlockSpec((Gb, H, S, D), lambda b: (b, 0, 0, 0)),  # input  (B,H,S,D)
                pl.BlockSpec((H, Gb, D, S), lambda b: (0, b, 0, 0)),  # input2 (H,B,D,S)
                pl.BlockSpec((H, Gb, S, D), lambda b: (0, b, 0, 0)),  # input3 (H,B,S,D)
                pl.BlockSpec((Gb, H, S, S), lambda b: (b, 0, 0, 0)),  # mask   (B,H,S,S)
            ],
            out_specs=[
                pl.BlockSpec((H, Gb, S, S), lambda b: (0, b, 0, 0)),  # q3     (H,B,S,S)
                pl.BlockSpec((H, Gb, S, D), lambda b: (0, b, 0, 0)),  # output (H,B,S,D)
            ],
        ),
        compiler_params=pltpu.CompilerParams(
            dimension_semantics=("parallel",),
            vmem_limit_bytes=vlim,
        ),
    )(inp, inp2, inp3, m)

    return q3, out


def _reference(inp, inp2, inp3, mask):
    B, H, S, D = inp.shape
    k = jnp.transpose(inp2, (1, 0, 2, 3))                     # (B,H,D,S)
    qk = jnp.einsum("bhsd,bhde->bhse", inp, k) / math.sqrt(S)
    m = jnp.reshape(mask, qk.shape).astype(jnp.float32)
    qk = jnp.where(m != 0, m, qk)
    q3 = jnp.transpose(qk, (1, 0, 2, 3))                      # (H,B,S,S)
    attn = jax.nn.softmax(q3, axis=-1)
    out = jnp.einsum("hbse,hbed->hbsd", attn, inp3)
    return q3, out


if __name__ == "__main__":
    B, H, S, D = 2, 2, 8, 16
    key = jax.random.PRNGKey(0)
    k1, k2, k3, k4 = jax.random.split(key, 4)

    inp = jax.random.normal(k1, (B, H, S, D), dtype=jnp.float32)
    inp2 = jax.random.normal(k2, (H, B, D, S), dtype=jnp.float32)
    inp3 = jax.random.normal(k3, (H, B, S, D), dtype=jnp.float32)
    # mask analogous to the PyTorch global: nonzero entries are -1e9, rest 0;
    # shape (1,16,16) has B*H*S*S = 256 elements, like mask.view(qk.size())
    mask = jnp.where(jax.random.uniform(k4, (1, 16, 16)) > 0.7, -1e9, 0.0).astype(
        jnp.float32
    )

    q3, out = model_forward(inp, inp2, inp3, mask)
    jax.block_until_ready((q3, out))

    q3_ref, out_ref = _reference(inp, inp2, inp3, mask)
    assert jnp.allclose(q3, q3_ref, atol=1e-5, rtol=1e-5)
    assert jnp.allclose(out, out_ref, atol=1e-5, rtol=1e-5)

    print("KERNEL_OK")
</pallas_src>

<mosaic_0001>
module attributes {stable_mosaic.version = 11 : i64} {
  func.func @_attn_kernel(%arg0: i32, %arg1: memref<2x2x8x16xf32, #tpu.memory_space<vmem>>, %arg2: memref<2x2x16x8xf32, #tpu.memory_space<vmem>>, %arg3: memref<2x2x8x16xf32, #tpu.memory_space<vmem>>, %arg4: memref<2x2x8x8xf32, #tpu.memory_space<vmem>>, %arg5: memref<2x2x8x8xf32, #tpu.memory_space<vmem>>, %arg6: memref<2x2x8x16xf32, #tpu.memory_space<vmem>>) attributes {dimension_semantics = [#tpu.dimension_semantics<parallel>], iteration_bounds = array<i64: 1>, scalar_prefetch = 0 : i64, scratch_operands = 0 : i64, tpu.core_type = #tpu.core_type<tc>, window_params = [{transform_indices = @transform_0, window_bounds = array<i64: 2, 2, 8, 16>}, {transform_indices = @transform_1, window_bounds = array<i64: 2, 2, 16, 8>}, {transform_indices = @transform_2, window_bounds = array<i64: 2, 2, 8, 16>}, {transform_indices = @transform_3, window_bounds = array<i64: 2, 2, 8, 8>}, {transform_indices = @transform_4, window_bounds = array<i64: 2, 2, 8, 8>}, {transform_indices = @transform_5, window_bounds = array<i64: 2, 2, 8, 16>}]} {
    %c0 = arith.constant 0 : index
    %c0_0 = arith.constant 0 : index
    %c0_1 = arith.constant 0 : index
    %c0_2 = arith.constant 0 : index
    %0 = vector.load %arg1[%c0, %c0_0, %c0_1, %c0_2] : memref<2x2x8x16xf32, #tpu.memory_space<vmem>>, vector<2x2x8x16xf32>
    %cst = arith.constant 0.353553385 : f32
    %1 = vector.broadcast %cst : f32 to vector<2x2x8x16xf32>
    %2 = arith.mulf %0, %1 : vector<2x2x8x16xf32>
    %c0_3 = arith.constant 0 : index
    %c0_4 = arith.constant 0 : index
    %c0_5 = arith.constant 0 : index
    %c0_6 = arith.constant 0 : index
    %3 = vector.load %arg2[%c0_3, %c0_4, %c0_5, %c0_6] : memref<2x2x16x8xf32, #tpu.memory_space<vmem>>, vector<2x2x16x8xf32>
    %c0_7 = arith.constant 0 : index
    %c0_8 = arith.constant 0 : index
    %c0_9 = arith.constant 0 : index
    %c0_10 = arith.constant 0 : index
    %4 = vector.load %arg3[%c0_7, %c0_8, %c0_9, %c0_10] : memref<2x2x8x16xf32, #tpu.memory_space<vmem>>, vector<2x2x8x16xf32>
    %c0_11 = arith.constant 0 : index
    %c0_12 = arith.constant 0 : index
    %c0_13 = arith.constant 0 : index
    %c0_14 = arith.constant 0 : index
    %5 = vector.load %arg4[%c0_11, %c0_12, %c0_13, %c0_14] : memref<2x2x8x8xf32, #tpu.memory_space<vmem>>, vector<2x2x8x8xf32>
    %6 = vector.extract_strided_slice %2 {offsets = [0, 0, 0, 0], sizes = [2, 1, 8, 16], strides = [1, 1, 1, 1]} : vector<2x2x8x16xf32> to vector<2x1x8x16xf32>
    %7 = vector.shape_cast %6 : vector<2x1x8x16xf32> to vector<2x8x16xf32>
    %8 = vector.extract_strided_slice %3 {offsets = [0, 0, 0, 0], sizes = [1, 2, 16, 8], strides = [1, 1, 1, 1]} : vector<2x2x16x8xf32> to vector<1x2x16x8xf32>
    %9 = vector.shape_cast %8 : vector<1x2x16x8xf32> to vector<2x16x8xf32>
    %10 = vector.extract_strided_slice %4 {offsets = [0, 0, 0, 0], sizes = [1, 2, 8, 16], strides = [1, 1, 1, 1]} : vector<2x2x8x16xf32> to vector<1x2x8x16xf32>
    %11 = vector.shape_cast %10 : vector<1x2x8x16xf32> to vector<2x8x16xf32>
    %12 = vector.extract_strided_slice %5 {offsets = [0, 0, 0, 0], sizes = [2, 1, 8, 8], strides = [1, 1, 1, 1]} : vector<2x2x8x8xf32> to vector<2x1x8x8xf32>
    %13 = vector.shape_cast %12 : vector<2x1x8x8xf32> to vector<2x8x8xf32>
    "tpu.trace_start"() <{level = 10 : i32, message = "bsd,bdt->bst"}> : () -> ()
    %cst_15 = arith.constant dense<0.000000e+00> : vector<2x8x8xf32>
    %14 = tpu.matmul %7, %9, %cst_15 {dimension_numbers = #tpu.dot_dimension_numbers<[2], [1], [1], [2], [0, 0, 0, 1, 1, 2], [0], [0]>} : vector<2x8x16xf32>, vector<2x16x8xf32>, vector<2x8x8xf32> -> vector<2x8x8xf32>
    %cst_16 = arith.constant 0.000000e+00 : f32
    "tpu.trace_stop"() : () -> ()
    %15 = vector.broadcast %cst_16 : f32 to vector<2x8x8xf32>
    %16 = arith.cmpf one, %13, %15 : vector<2x8x8xf32>
    %17 = arith.select %16, %13, %14 : vector<2x8x8xi1>, vector<2x8x8xf32>
    %c0_17 = arith.constant 0 : index
    %c0_18 = arith.constant 0 : index
    %c0_19 = arith.constant 0 : index
    %c0_20 = arith.constant 0 : index
    %18 = vector.load %arg5[%c0_17, %c0_18, %c0_19, %c0_20] : memref<2x2x8x8xf32, #tpu.memory_space<vmem>>, vector<1x2x8x8xf32>
    %19 = vector.shape_cast %18 : vector<1x2x8x8xf32> to vector<2x8x8xf32>
    %20 = vector.shape_cast %17 : vector<2x8x8xf32> to vector<1x2x8x8xf32>
    tpu.vector_store %arg5[%c0_17, %c0_18, %c0_19, %c0_20], %20 {strides = array<i32>} : memref<2x2x8x8xf32, #tpu.memory_space<vmem>>, vector<1x2x8x8xf32>,
    %cst_21 = arith.constant dense<0xFF800000> : vector<2x8xf32>
    %21 = vector.multi_reduction <maximumf>, %17, %cst_21 [2] : vector<2x8x8xf32> to vector<2x8xf32>
    %22 = vector.shape_cast %21 : vector<2x8xf32> to vector<2x8x1xf32>
    %23 = vector.broadcast %22 : vector<2x8x1xf32> to vector<2x8x8xf32>
    %24 = arith.subf %17, %23 : vector<2x8x8xf32>
    %25 = math.exp %24 : vector<2x8x8xf32>
    %cst_22 = arith.constant dense<0.000000e+00> : vector<2x8xf32>
    %26 = vector.multi_reduction <add>, %25, %cst_22 [2] : vector<2x8x8xf32> to vector<2x8xf32>
    %27 = vector.shape_cast %26 : vector<2x8xf32> to vector<2x8x1xf32>
    %28 = vector.broadcast %27 : vector<2x8x1xf32> to vector<2x8x8xf32>
    %29 = arith.divf %25, %28 : vector<2x8x8xf32>
    "tpu.trace_start"() <{level = 10 : i32, message = "bst,btd->bsd"}> : () -> ()
    %cst_23 = arith.constant dense<0.000000e+00> : vector<2x8x16xf32>
    %30 = tpu.matmul %29, %11, %cst_23 {dimension_numbers = #tpu.dot_dimension_numbers<[2], [1], [1], [2], [0, 0, 0, 1, 1, 2], [0], [0]>} : vector<2x8x8xf32>, vector<2x8x16xf32>, vector<2x8x16xf32> -> vector<2x8x16xf32>
    "tpu.trace_stop"() : () -> ()
    %c0_24 = arith.constant 0 : index
    %c0_25 = arith.constant 0 : index
    %c0_26 = arith.constant 0 : index
    %c0_27 = arith.constant 0 : index
    %31 = vector.load %arg6[%c0_24, %c0_25, %c0_26, %c0_27] : memref<2x2x8x16xf32, #tpu.memory_space<vmem>>, vector<1x2x8x16xf32>
    %32 = vector.shape_cast %31 : vector<1x2x8x16xf32> to vector<2x8x16xf32>
    %33 = vector.shape_cast %30 : vector<2x8x16xf32> to vector<1x2x8x16xf32>
    tpu.vector_store %arg6[%c0_24, %c0_25, %c0_26, %c0_27], %33 {strides = array<i32>} : memref<2x2x8x16xf32, #tpu.memory_space<vmem>>, vector<1x2x8x16xf32>,
    %34 = vector.extract_strided_slice %2 {offsets = [0, 1, 0, 0], sizes = [2, 1, 8, 16], strides = [1, 1, 1, 1]} : vector<2x2x8x16xf32> to vector<2x1x8x16xf32>
    %35 = vector.shape_cast %34 : vector<2x1x8x16xf32> to vector<2x8x16xf32>
    %36 = vector.extract_strided_slice %3 {offsets = [1, 0, 0, 0], sizes = [1, 2, 16, 8], strides = [1, 1, 1, 1]} : vector<2x2x16x8xf32> to vector<1x2x16x8xf32>
    %37 = vector.shape_cast %36 : vector<1x2x16x8xf32> to vector<2x16x8xf32>
    %38 = vector.extract_strided_slice %4 {offsets = [1, 0, 0, 0], sizes = [1, 2, 8, 16], strides = [1, 1, 1, 1]} : vector<2x2x8x16xf32> to vector<1x2x8x16xf32>
    %39 = vector.shape_cast %38 : vector<1x2x8x16xf32> to vector<2x8x16xf32>
    %40 = vector.extract_strided_slice %5 {offsets = [0, 1, 0, 0], sizes = [2, 1, 8, 8], strides = [1, 1, 1, 1]} : vector<2x2x8x8xf32> to vector<2x1x8x8xf32>
    %41 = vector.shape_cast %40 : vector<2x1x8x8xf32> to vector<2x8x8xf32>
    "tpu.trace_start"() <{level = 10 : i32, message = "bsd,bdt->bst"}> : () -> ()
    %cst_28 = arith.constant dense<0.000000e+00> : vector<2x8x8xf32>
    %42 = tpu.matmul %35, %37, %cst_28 {dimension_numbers = #tpu.dot_dimension_numbers<[2], [1], [1], [2], [0, 0, 0, 1, 1, 2], [0], [0]>} : vector<2x8x16xf32>, vector<2x16x8xf32>, vector<2x8x8xf32> -> vector<2x8x8xf32>
    %cst_29 = arith.constant 0.000000e+00 : f32
    "tpu.trace_stop"() : () -> ()
    %43 = vector.broadcast %cst_29 : f32 to vector<2x8x8xf32>
    %44 = arith.cmpf one, %41, %43 : vector<2x8x8xf32>
    %45 = arith.select %44, %41, %42 : vector<2x8x8xi1>, vector<2x8x8xf32>
    %c1 = arith.constant 1 : index
    %c0_30 = arith.constant 0 : index
    %c0_31 = arith.constant 0 : index
    %c0_32 = arith.constant 0 : index
    %46 = vector.load %arg5[%c1, %c0_30, %c0_31, %c0_32] : memref<2x2x8x8xf32, #tpu.memory_space<vmem>>, vector<1x2x8x8xf32>
    %47 = vector.shape_cast %46 : vector<1x2x8x8xf32> to vector<2x8x8xf32>
    %48 = vector.shape_cast %45 : vector<2x8x8xf32> to vector<1x2x8x8xf32>
    tpu.vector_store %arg5[%c1, %c0_30, %c0_31, %c0_32], %48 {strides = array<i32>} : memref<2x2x8x8xf32, #tpu.memory_space<vmem>>, vector<1x2x8x8xf32>,
    %cst_33 = arith.constant dense<0xFF800000> : vector<2x8xf32>
    %49 = vector.multi_reduction <maximumf>, %45, %cst_33 [2] : vector<2x8x8xf32> to vector<2x8xf32>
    %50 = vector.shape_cast %49 : vector<2x8xf32> to vector<2x8x1xf32>
    %51 = vector.broadcast %50 : vector<2x8x1xf32> to vector<2x8x8xf32>
    %52 = arith.subf %45, %51 : vector<2x8x8xf32>
    %53 = math.exp %52 : vector<2x8x8xf32>
    %cst_34 = arith.constant dense<0.000000e+00> : vector<2x8xf32>
    %54 = vector.multi_reduction <add>, %53, %cst_34 [2] : vector<2x8x8xf32> to vector<2x8xf32>
    %55 = vector.shape_cast %54 : vector<2x8xf32> to vector<2x8x1xf32>
    %56 = vector.broadcast %55 : vector<2x8x1xf32> to vector<2x8x8xf32>
    %57 = arith.divf %53, %56 : vector<2x8x8xf32>
    "tpu.trace_start"() <{level = 10 : i32, message = "bst,btd->bsd"}> : () -> ()
    %cst_35 = arith.constant dense<0.000000e+00> : vector<2x8x16xf32>
    %58 = tpu.matmul %57, %39, %cst_35 {dimension_numbers = #tpu.dot_dimension_numbers<[2], [1], [1], [2], [0, 0, 0, 1, 1, 2], [0], [0]>} : vector<2x8x8xf32>, vector<2x8x16xf32>, vector<2x8x16xf32> -> vector<2x8x16xf32>
    "tpu.trace_stop"() : () -> ()
    %c1_36 = arith.constant 1 : index
    %c0_37 = arith.constant 0 : index
    %c0_38 = arith.constant 0 : index
    %c0_39 = arith.constant 0 : index
    %59 = vector.load %arg6[%c1_36, %c0_37, %c0_38, %c0_39] : memref<2x2x8x16xf32, #tpu.memory_space<vmem>>, vector<1x2x8x16xf32>
    %60 = vector.shape_cast %59 : vector<1x2x8x16xf32> to vector<2x8x16xf32>
    %61 = vector.shape_cast %58 : vector<2x8x16xf32> to vector<1x2x8x16xf32>
    tpu.vector_store %arg6[%c1_36, %c0_37, %c0_38, %c0_39], %61 {strides = array<i32>} : memref<2x2x8x16xf32, #tpu.memory_space<vmem>>, vector<1x2x8x16xf32>,
    return
  }
  func.func @transform_0(%arg0: i32) -> (i32, i32, i32, i32) {
    %c0_i32 = arith.constant 0 : i32
    %c0_i32_0 = arith.constant 0 : i32
    %c0_i32_1 = arith.constant 0 : i32
    %c0_i32_2 = arith.constant 0 : i32
    return %arg0, %c0_i32, %c0_i32_0, %c0_i32_1 : i32, i32, i32, i32
  }
  func.func @transform_1(%arg0: i32) -> (i32, i32, i32, i32) {
    %c0_i32 = arith.constant 0 : i32
    %c0_i32_0 = arith.constant 0 : i32
    %c0_i32_1 = arith.constant 0 : i32
    %c0_i32_2 = arith.constant 0 : i32
    return %c0_i32, %arg0, %c0_i32_0, %c0_i32_1 : i32, i32, i32, i32
  }
  func.func @transform_2(%arg0: i32) -> (i32, i32, i32, i32) {
    %c0_i32 = arith.constant 0 : i32
    %c0_i32_0 = arith.constant 0 : i32
    %c0_i32_1 = arith.constant 0 : i32
    %c0_i32_2 = arith.constant 0 : i32
    return %c0_i32, %arg0, %c0_i32_0, %c0_i32_1 : i32, i32, i32, i32
  }
  func.func @transform_3(%arg0: i32) -> (i32, i32, i32, i32) {
    %c0_i32 = arith.constant 0 : i32
    %c0_i32_0 = arith.constant 0 : i32
    %c0_i32_1 = arith.constant 0 : i32
    %c0_i32_2 = arith.constant 0 : i32
    return %arg0, %c0_i32, %c0_i32_0, %c0_i32_1 : i32, i32, i32, i32
  }
  func.func @transform_4(%arg0: i32) -> (i32, i32, i32, i32) {
    %c0_i32 = arith.constant 0 : i32
    %c0_i32_0 = arith.constant 0 : i32
    %c0_i32_1 = arith.constant 0 : i32
    %c0_i32_2 = arith.constant 0 : i32
    return %c0_i32, %arg0, %c0_i32_0, %c0_i32_1 : i32, i32, i32, i32
  }
  func.func @transform_5(%arg0: i32) -> (i32, i32, i32, i32) {
    %c0_i32 = arith.constant 0 : i32
    %c0_i32_0 = arith.constant 0 : i32
    %c0_i32_1 = arith.constant 0 : i32
    %c0_i32_2 = arith.constant 0 : i32
    return %c0_i32, %arg0, %c0_i32_0, %c0_i32_1 : i32, i32, i32, i32
  }
}

</mosaic_0001>

<bundles_post_ra>
// kernel: tpu_custom_call.1
= control target key start
LH: loop header
LB: loop body
LE: loop exit
PB: predicated region body
PF: predicated region fallthrough
CT: control target
= control target key end

     0   :  { %11 = vsyncpa [#allocation3], 0  ;;  %vm45_vm0 = vcmask 130048   ;;  %s585_s0 = inlined_call_operand.vmem [shape: f32[2,2,8,16], index: 0, kind: input, shape index: {}]   ;;  %s586_s1 = inlined_call_operand.vmem [shape: f32[2,2,16,8], index: 1, kind: input, shape index: {}]   ;;  %s587_s2 = inlined_call_operand.vmem [shape: f32[2,2,8,16], index: 2, kind: input, shape index: {}]   ;;  %s588_s3 = inlined_call_operand.vmem [shape: f32[2,2,8,8], index: 3, kind: input, shape index: {}]   ;;  %s589_s4 = inlined_call_operand.hbm [shape: f32[2,2,8,8], index: 4, kind: output, shape index: {0}]   ;;  %s590_s5 = inlined_call_operand.hbm [shape: f32[2,2,8,16], index: 5, kind: output, shape index: {1}]  }
   0x1   :  { %v30_v0 = vld [vmem:[%s586_s1 + $0x8] sm:$0xff]  ;;  %v29_v1 = vld [vmem:[%s586_s1] sm:$0xff]  ;;  %v32_v4 = vld [vmem:[%s586_s1 + $0x18] sm:$0xff] }
   0x2   :  { %v21_v2 = vld [vmem:[%s585_s0] sm:$0xff]  ;;  %63 = vmatpush.msra.mxu0 %v30_v0  ;;  %v31_v5 = vld [vmem:[%s586_s1 + $0x10] sm:$0xff]  ;;  %86 = vmatpush.msra.mxu1 %v32_v4 }
   0x3   :  { %v25_v3 = vmul.f32 0.35355338, %v21_v2  ;;  %v23_v6 = vld [vmem:[%s585_s0 + $0x10] sm:$0xff] }
   0x4   :  { %v27_v7 = vmul.f32 0.35355338, %v23_v6 }
   0x5   :  { %12 = vsyncpa [#allocation5], 0  ;;  %64 = vmatpush.msra.mxu0 %v29_v1  ;;  %87 = vmatpush.msra.mxu1 %v31_v5  ;;  %v41_v8 = vld [vmem:[%s588_s3] sm:$0xff]  ;;  %v43_v9 = vld [vmem:[%s588_s3 + $0x10] sm:$0xff]  ;;  %vm96_vm2 = vcmask 64512   ;;  %s351_s8 = sshll.u32 %s589_s4, 4  ;;  %s352_s8 = int_to_ptr.hbm [resolvable:$true] %s351_s8 }
   0x6   :  { %381 = vmatmul.msk.f32.vlgmr.msra.gmra.mxu0 %vm45_vm0, %v25_v3  ;;  %382 = vmatmul.msk.f32.vlgmr.msra.gmra.mxu1 %vm45_vm0, %v27_v7  ;;  %vm92_vm1 = vcmp.ne.f32.partialorder %v41_v8, 0.0  ;;  %vm93_vm3 = vcmp.ne.f32.partialorder %v43_v9, 0.0  ;;  %v37_v26 = vld [vmem:[%s587_s2] sm:$0xff]  ;;  %v34_v27 = vld [vmem:[%s586_s1 + $0x28] sm:$0xff]  ;;  %v36_v30 = vld [vmem:[%s586_s1 + $0x38] sm:$0xff]  ;;  %s462_s9 = smov 128  }
   0x7   :  { %165 = vmatpush.msra.mxu2 %v37_v26  ;;  %v33_v28 = vld [vmem:[%s586_s1 + $0x20] sm:$0xff]  ;;  %v38_v29 = vld [vmem:[%s587_s2 + $0x8] sm:$0xff]  ;;  %v35_v31 = vld [vmem:[%s586_s1 + $0x30] sm:$0xff]  ;;  %s463_s10 = smov 8   ;;  %s464_s11 = smov [#allocation4]  }
   0x8   :  { %188 = vmatpush.msra.mxu3 %v38_v29  ;;  %v22_v51 = vld [vmem:[%s585_s0 + $0x8] sm:$0xff]  ;;  %v24_v58 = vld [vmem:[%s585_s0 + $0x18] sm:$0xff]  ;;  %s362_s12 = sshll.u32 %s464_s11, 4  ;;  %s364_s15 = sshll.u32 %s590_s5, 4  ;;  %s363_s12 = int_to_ptr.vmem [resolvable:$true] %s362_s12  ;;  %s365_s15 = int_to_ptr.hbm [resolvable:$true] %s364_s15 }
   0x9   :  { %212 = vmatpush.msrb.mxu2 %v34_v27  ;;  %v26_v55 = vmul.f32 0.35355338, %v22_v51  ;;  %v28_v59 = vmul.f32 0.35355338, %v24_v58  ;;  %v42_v61 = vld [vmem:[%s588_s3 + $0x8] sm:$0xff]  ;;  %v44_v2 = vld [vmem:[%s588_s3 + $0x18] sm:$0xff] }
   0xa   :  { %235 = vmatpush.msrb.mxu3 %v36_v30  ;;  %vm241_vm12 = vcmp.ne.f32.partialorder %v42_v61, 0.0  ;;  %vm242_vm13 = vcmp.ne.f32.partialorder %v44_v2, 0.0 }
   0xb   :  { %213 = vmatpush.msrb.mxu2 %v33_v28 }
   0xc   :  { %236 = vmatpush.msrb.mxu3 %v35_v31 }
  0x83   :  { %v66_v10 = vpop.f32.mrf.mxu0  ;;  %v89_v12 = vpop.f32.mrf.mxu1 }
  0x84   :  { %v94_v11 = vsel %vm92_vm1, %v41_v8, %v66_v10  ;;  %v95_v14 = vsel %vm93_vm3, %v43_v9, %v89_v12 }
  0x85   :  { %97 = vst.msk [vmem:[#allocation2] sm:$0xff] %vm96_vm2, %v94_v11  ;;  %v99_v13 = vsel %vm96_vm2, %v94_v11, -inf  ;;  %v102_v15 = vsel %vm96_vm2, %v95_v14, -inf }
  0x86   :  { %100 = vmax.xlane.f32.xlu0 %v99_v13  ;;  %98 = vst.msk [vmem:[#allocation2 + $0x8] sm:$0xff] %vm96_vm2, %v95_v14 }
  0x8e   :  { %103 = vmax.xlane.f32.xlu0 %v102_v15 }
  0xf9   :  { %v101_v16 = vpop.xlane.xlu0 %100 }
  0xfa   :  { %v105_v17 = vsub.f32 %v94_v11, %v101_v16  ;;  %v39_v16 = vld [vmem:[%s587_s2 + $0x10] sm:$0xff] }
  0xfb   :  { %314 = vmatpush.msrb.mxu0 %v39_v16 }
  0xfc   :  { %v107_v18 = vmul.f32 1.442695, %v105_v17  ;;  %v40_v17 = vld [vmem:[%s587_s2 + $0x18] sm:$0xff]  ;;  %s461_s2 = smov [#allocation2]  }
  0xfd   :  { %337 = vmatpush.msrb.mxu1 %v40_v17  ;;  %s349_s30 = sshll.u32 %s461_s2, 4  ;;  %s350_s30 = int_to_ptr.vmem [resolvable:$true] %s349_s30 }
  0xfe   :  { %393 = vpow2.f32 %v107_v18 }
 0x101   :  { %v104_v19 = vpop.xlane.xlu0 %103 }
 0x102   :  { %v106_v20 = vsub.f32 %v95_v14, %v104_v19 }
 0x104   :  { %v394_v21 = vpop.eup %393  ;;  %v109_v22 = vmul.f32 1.442695, %v106_v20 }
 0x105   :  { %v111_v23 = vsel %vm96_vm2, %v394_v21, 0.0 }
 0x106   :  { %395 = vpow2.f32 %v109_v22  ;;  %112 = vadd.xlane.f32.xlu1 %v111_v23 }
 0x10c   :  { %v396_v24 = vpop.eup %395 }
 0x10d   :  { %v114_v25 = vsel %vm96_vm2, %v396_v24, 0.0 }
 0x10e   :  { %115 = vadd.xlane.f32.xlu1 %v114_v25 }
 0x179   :  { %v113_v32 = vpop.xlane.xlu1 %112 }
 0x17a   :  { %397 = vrcp.f32 %v113_v32  ;;  %v128_v37 = vand.u32 2147483648, %v113_v32  ;;  %v126_v39 = vand.u32 2147483647, %v113_v32  ;;  %vm122_vm5 = vweird.f32 %v113_v32 }
 0x17c   :  { %v129_v42 = vor.u32 1.1754944e-38, %v128_v37  ;;  %vm127_vm7 = vcmp.eq.f32.partialorder %v126_v39, 8.507059e+37 }
 0x180   :  { %v398_v33 = vpop.eup %397 }
 0x181   :  { %v118_v34 = vmul.f32 %v398_v33, %v113_v32  ;;  %v116_v35 = vpop.xlane.xlu1 %115  ;;  %vm123_vm4 = vweird.f32 %v398_v33 }
 0x182   :  { %399 = vrcp.f32 %v116_v35  ;;  %vm124_vm6 = vmor %vm122_vm5, %vm123_vm4  ;;  %v143_v48 = vand.u32 2147483648, %v116_v35  ;;  %v141_v50 = vand.u32 2147483647, %v116_v35  ;;  %vm137_vm9 = vweird.f32 %v116_v35 }
 0x183   :  { %v119_v36 = vsub.f32 1.0, %v118_v34 }
 0x184   :  { %v144_v53 = vor.u32 1.1754944e-38, %v143_v48  ;;  %vm142_vm11 = vcmp.eq.f32.partialorder %v141_v50, 8.507059e+37 }
 0x185   :  { %v120_v38 = vmul.f32 %v398_v33, %v119_v36 }
 0x187   :  { %v121_v40 = vadd.f32 %v398_v33, %v120_v38 }
 0x188   :  { %v400_v41 = vpop.eup %399 }
 0x189   :  { %v133_v43 = vmul.f32 %v400_v41, %v116_v35  ;;  %v125_v44 = vsel %vm124_vm6, %v398_v33, %v121_v40  ;;  %vm138_vm8 = vweird.f32 %v400_v41 }
 0x18a   :  { %v130_v45 = vsel %vm127_vm7, %v129_v42, %v125_v44  ;;  %vm139_vm10 = vmor %vm137_vm9, %vm138_vm8 }
 0x18b   :  { %v134_v46 = vsub.f32 1.0, %v133_v43  ;;  %v131_v47 = vmul.f32 %v394_v21, %v130_v45 }
 0x18d   :  { %v135_v49 = vmul.f32 %v400_v41, %v134_v46  ;;  %383 = vmatmul.msk.f32.vlgmr.msra.gmra.mxu2 %vm96_vm2, %v131_v47 }
 0x18f   :  { %v136_v52 = vadd.f32 %v400_v41, %v135_v49 }
 0x191   :  { %v140_v54 = vsel %vm139_vm10, %v400_v41, %v136_v52 }
 0x192   :  { %v145_v56 = vsel %vm142_vm11, %v144_v53, %v140_v54 }
 0x193   :  { %v146_v57 = vmul.f32 %v396_v24, %v145_v56 }
 0x195   :  { %384 = vmatmul.msk.f32.vlgmr.msra.gmra.mxu3 %vm96_vm2, %v146_v57  ;;  %385 = vmatmul.msk.f32.vlgmr.msrb.gmra.mxu2 %vm45_vm0, %v26_v55 }
 0x19d   :  { %386 = vmatmul.msk.f32.vlgmr.msrb.gmra.mxu3 %vm45_vm0, %v28_v59 }
 0x210   :  { %v167_v60 = vpop.f32.mrf.mxu2 }
 0x211   :  { %193 = vst.msk [vmem:[#allocation4] sm:$0xff] %vm45_vm0, %v167_v60 }
 0x218   :  { %v190_v62 = vpop.f32.mrf.mxu3  ;;  %v215_v63 = vpop.f32.mrf.mxu2 }
 0x219   :  { %194 = vst.msk [vmem:[#allocation4 + $0x8] sm:$0xff] %vm45_vm0, %v190_v62  ;;  %v243_v0 = vsel %vm241_vm12, %v42_v61, %v215_v63 }
 0x21a   :  { %246 = vst.msk [vmem:[#allocation2 + $0x10] sm:$0xff] %vm96_vm2, %v243_v0  ;;  %v248_v1 = vsel %vm96_vm2, %v243_v0, -inf }
 0x21b   :  { %249 = vmax.xlane.f32.xlu2 %v248_v1 }
 0x220   :  { %v238_v3 = vpop.f32.mrf.mxu3 }
 0x221   :  { %v244_v4 = vsel %vm242_vm13, %v44_v2, %v238_v3 }
 0x222   :  { %247 = vst.msk [vmem:[#allocation2 + $0x18] sm:$0xff] %vm96_vm2, %v244_v4  ;;  %v251_v5 = vsel %vm96_vm2, %v244_v4, -inf }
 0x223   :  { %252 = vmax.xlane.f32.xlu2 %v251_v5  ;;  %357 = dma.vmem_to_hbm [thread:$0]  %s350_s30, 512, %s352_s8, [#allocation3], %s462_s9, %s462_s9, %s463_s10  }
 0x28e   :  { %v250_v6 = vpop.xlane.xlu2 %249 }
 0x28f   :  { %v254_v7 = vsub.f32 %v243_v0, %v250_v6 }
 0x291   :  { %v256_v8 = vmul.f32 1.442695, %v254_v7 }
 0x293   :  { %401 = vpow2.f32 %v256_v8 }
 0x296   :  { %v253_v9 = vpop.xlane.xlu2 %252 }
 0x297   :  { %v255_v10 = vsub.f32 %v244_v4, %v253_v9 }
 0x299   :  { %v402_v11 = vpop.eup %401  ;;  %v258_v12 = vmul.f32 1.442695, %v255_v10 }
 0x29a   :  { %v260_v13 = vsel %vm96_vm2, %v402_v11, 0.0 }
 0x29b   :  { %403 = vpow2.f32 %v258_v12  ;;  %261 = vadd.xlane.f32.xlu0 %v260_v13 }
 0x2a1   :  { %v404_v14 = vpop.eup %403 }
 0x2a2   :  { %v263_v15 = vsel %vm96_vm2, %v404_v14, 0.0 }
 0x2a3   :  { %264 = vadd.xlane.f32.xlu1 %v263_v15 }
 0x30e   :  { %v262_v18 = vpop.xlane.xlu0 %261 }
 0x30f   :  { %405 = vrcp.f32 %v262_v18  ;;  %v277_v23 = vand.u32 2147483648, %v262_v18  ;;  %v275_v25 = vand.u32 2147483647, %v262_v18  ;;  %vm271_vm15 = vweird.f32 %v262_v18 }
 0x311   :  { %v278_v28 = vor.u32 1.1754944e-38, %v277_v23  ;;  %vm276_vm3 = vcmp.eq.f32.partialorder %v275_v25, 8.507059e+37 }
 0x315   :  { %v406_v19 = vpop.eup %405 }
 0x316   :  { %v267_v20 = vmul.f32 %v406_v19, %v262_v18  ;;  %v265_v21 = vpop.xlane.xlu1 %264  ;;  %vm272_vm14 = vweird.f32 %v406_v19 }
 0x317   :  { %407 = vrcp.f32 %v265_v21  ;;  %vm273_vm1 = vmor %vm271_vm15, %vm272_vm14  ;;  %v292_v34 = vand.u32 2147483648, %v265_v21  ;;  %v290_v36 = vand.u32 2147483647, %v265_v21  ;;  %vm286_vm5 = vweird.f32 %v265_v21 }
 0x318   :  { %v268_v22 = vsub.f32 1.0, %v267_v20 }
 0x319   :  { %v293_v38 = vor.u32 1.1754944e-38, %v292_v34  ;;  %vm291_vm7 = vcmp.eq.f32.partialorder %v290_v36, 8.507059e+37 }
 0x31a   :  { %v269_v24 = vmul.f32 %v406_v19, %v268_v22 }
 0x31c   :  { %v270_v26 = vadd.f32 %v406_v19, %v269_v24 }
 0x31d   :  { %v408_v27 = vpop.eup %407 }
 0x31e   :  { %v274_v29 = vsel %vm273_vm1, %v406_v19, %v270_v26  ;;  %v282_v30 = vmul.f32 %v408_v27, %v265_v21  ;;  %vm287_vm4 = vweird.f32 %v408_v27 }
 0x31f   :  { %v279_v31 = vsel %vm276_vm3, %v278_v28, %v274_v29  ;;  %vm288_vm6 = vmor %vm286_vm5, %vm287_vm4 }
 0x320   :  { %v283_v32 = vsub.f32 1.0, %v282_v30  ;;  %v280_v33 = vmul.f32 %v402_v11, %v279_v31 }
 0x322   :  { %v284_v35 = vmul.f32 %v408_v27, %v283_v32  ;;  %387 = vmatmul.msk.f32.vlgmr.msrb.gmra.mxu0 %vm96_vm2, %v280_v33 }
 0x324   :  { %v285_v37 = vadd.f32 %v408_v27, %v284_v35 }
 0x326   :  { %v289_v39 = vsel %vm288_vm6, %v408_v27, %v285_v37 }
 0x327   :  { %v294_v40 = vsel %vm291_vm7, %v293_v38, %v289_v39 }
 0x328   :  { %v295_v41 = vmul.f32 %v404_v14, %v294_v40 }
 0x32a   :  { %388 = vmatmul.msk.f32.vlgmr.msrb.gmra.mxu1 %vm96_vm2, %v295_v41 }
 0x39f   :  { %v316_v42 = vpop.f32.mrf.mxu0 }
 0x3a0   :  { %343 = vst.msk [vmem:[#allocation4 + $0x10] sm:$0xff] %vm45_vm0, %v316_v42 }
 0x3a7   :  { %v339_v43 = vpop.f32.mrf.mxu1 }
 0x3a8   :  { %344 = vst.msk [vmem:[#allocation4 + $0x18] sm:$0xff] %vm45_vm0, %v339_v43 }
 0x3a9   :  { %370 = dma.vmem_to_hbm [thread:$0]  %s363_s12, 512, %s365_s15, [#allocation5], %s462_s9, %s462_s9, %s463_s10  }
 0x3aa   :  { %457 = dma.done.wait [#allocation3], 512  }
 0x3ab   :  { %458 = vsyncadd [#allocation3], 4294966784 }
 0x3ac   :  { %459 = dma.done.wait [#allocation5], 512  }
 0x3ad   :  { %460 = vsyncadd [#allocation5], 4294966784 }
 0x3ae   :  { %379 = vsyncpa [#allocation3], 1 }
 0x3af   :  { %380 = vsyncpa [#allocation5], 1 }

</bundles_post_ra>
